<compile_context>
chip_gen: v5e
topology: v5e:2x2
jax: 0.10.0
libtpu: 0.0.40
codegen_flags: <defaults>
</compile_context>

<pallas_src>
import functools

import numpy as np
import jax
import jax.numpy as jnp
from jax.experimental import pallas as pl
from jax.experimental.pallas import tpu as pltpu


# -----------------------------------------------------------------------------
# helpers
# -----------------------------------------------------------------------------
def _pick_tile_sublane(n, cap=256, requested=None):
    """Tile size on a sublane axis: divides n and is a multiple of 8 (or the full n)."""
    if requested is not None:
        t = int(requested)
        if n % t == 0 and (t % 8 == 0 or t == n):
            return t
    cap = max(8, min(int(cap), n))
    for t in range(cap - cap % 8, 7, -8):
        if n % t == 0:
            return t
    return n


def _pick_tile_lane(m, cap=512, requested=None):
    """Tile size on the lane axis: divides m and is a multiple of 128 (or the full m)."""
    if requested is not None:
        t = int(requested)
        if m % t == 0 and (t % 128 == 0 or t == m):
            return t
    if m <= 128:
        return m
    cap = max(128, min(int(cap), m))
    for t in range(cap - cap % 128, 127, -128):
        if m % t == 0:
            return t
    return m


def _vmem_limit_bytes():
    """<= half of physical VMEM: 48 MiB on v5e/v6e (128 MiB), 32 MiB on v7x (64 MiB)."""
    cap = 64 * 1024 * 1024
    try:
        cap = int(getattr(pltpu.get_tpu_info(), "vmem_capacity_bytes", cap))
    except Exception:
        pass
    return min(48 * 1024 * 1024, cap // 2)


# -----------------------------------------------------------------------------
# Kernel 1: rigid-body noising (FARigidModel.mean + rotate + translation)
#   operates on the native (B, N, 14*3) layout; rotation folded into kron(I_14, R^T).
# -----------------------------------------------------------------------------
def rigid_noise_kernel(x_ref, rk_ref, t_ref, o_ref):
    """x_ref: (1, TN, 42) coords tile; rk_ref: (1, 42, 42) block-diag kron(I_14, R^T);
    t_ref: (1, 1, 42) tiled effective translation; o_ref: (1, TN, 42)."""
    o_ref[0] = (jnp.dot(x_ref[0], rk_ref[0], preferred_element_type=jnp.float32)
                + t_ref[0])


def rigid_noise(X, mask, w, t, tile_n=None):
    """X: (B, N, 14, 3); mask: (B, N); w, t: (B, 3). Returns noised coords (B, N, 14, 3)."""
    B, N = X.shape[0], X.shape[1]
    X = X.astype(jnp.float32)

    # masked CA centroid (tiny; plain JAX)
    ca = X[:, :, 1, :]                                                      # (B, N, 3)
    m = mask.reshape(B, N, 1).astype(jnp.float32)
    center = (ca * m).sum(axis=1) / jnp.maximum(m.sum(axis=1), 1e-6)        # (B, 3)

    # Rodrigues rotation matrix R = I + c1*K + c2*K^2  (== X + c1 w×X + c2 w×(w×X))
    w = w.astype(jnp.float32)
    t = t.astype(jnp.float32)
    theta = jnp.linalg.norm(w, axis=-1, keepdims=True)                      # (B, 1)
    c1 = jnp.sin(theta) / jnp.maximum(theta, 1e-6)
    c2 = (1.0 - jnp.cos(theta)) / jnp.maximum(theta * theta, 1e-6)
    wx, wy, wz = w[:, 0], w[:, 1], w[:, 2]
    zeros = jnp.zeros_like(wx)
    K = jnp.stack([zeros, -wz, wy,
                   wz, zeros, -wx,
                   -wy, wx, zeros], axis=-1).reshape(B, 3, 3)
    R = (jnp.eye(3, dtype=jnp.float32)[None]
         + c1[:, :, None] * K + c2[:, :, None] * jnp.matmul(K, K))          # (B, 3, 3)

    # fold centering into an effective translation: R(X - c) + t + c = X R^T + (t + c - R c)
    t_eff = t + center - jnp.einsum("bij,bj->bi", R, center)                # (B, 3)

    # block-diagonal kron(I_14, R^T): kernel acts directly on the native (B, N, 14*3) layout,
    # so HBM traffic is exactly one read + one write of the coordinates (no wrapper transposes).
    RT = jnp.swapaxes(R, 1, 2)                                              # (B, 3, 3)
    eye14 = jnp.eye(14, dtype=jnp.float32)
    Rk = (eye14[None, :, None, :, None] * RT[:, None, :, None, :]).reshape(B, 42, 42)
    t_tile = jnp.tile(t_eff, (1, 14)).reshape(B, 1, 42)

    Xf = X.reshape(B, N, 42)                                                # free reshape
    TN = _pick_tile_sublane(N, cap=512, requested=tile_n)

    out = pl.pallas_call(
        rigid_noise_kernel,
        out_shape=jax.ShapeDtypeStruct((B, N, 42), jnp.float32),
        grid_spec=pltpu.PrefetchScalarGridSpec(
            num_scalar_prefetch=0,
            grid=(B, N // TN),
            in_specs=[pl.BlockSpec((1, TN, 42), lambda b, i: (b, i, 0)),
                      pl.BlockSpec((1, 42, 42), lambda b, i: (b, 0, 0)),
                      pl.BlockSpec((1, 1, 42), lambda b, i: (b, 0, 0))],
            out_specs=pl.BlockSpec((1, TN, 42), lambda b, i: (b, i, 0)),
        ),
        compiler_params=pltpu.CompilerParams(
            dimension_semantics=("parallel", "parallel")),
    )(Xf, Rk, t_tile)
    return out.reshape(B, N, 14, 3)


# -----------------------------------------------------------------------------
# Kernel 2: pairwise energy head (SiLU + W_o over U_o-projected features,
#   distance + validity masking, masked sum).  M on the lane axis, static H-loop.
# -----------------------------------------------------------------------------
def energy_kernel(wo_ref, act_ref, hbp_ref, htpT_ref, bx_ref, txT_ref, bm_ref, tm_ref,
                  o_ref, acc_ref, *, threshold):
    """Grid step (b, ni, mi): binder tile ni x target tile mi of batch element b.

    wo_ref:   (H+1,) f32 SMEM       — [w_o (H), b_o]          (scalar prefetch)
    act_ref:  (B*n_n*n_m,) i32 SMEM — per-tile activity flags (scalar prefetch)
    hbp_ref:  (1, TN, H) f32  binder features already projected by U_o (tile)
    htpT_ref: (1, H, TM) f32  target features projected by U_o, transposed (M on lanes)
    bx_ref:   (1, TN, 3) f32  binder CA coords (tile)
    txT_ref:  (1, 3, TM) f32  target CA coords^T (tile)
    bm_ref:   (1, TN, 1) f32  binder mask (tile)
    tm_ref:   (1, 1, TM) f32  target mask (tile)
    o_ref:    (1, 1) f32      masked energy (written once at the last tile)
    acc_ref:  (1, 1) f32 VMEM scratch — energy accumulator
    """
    b = pl.program_id(0)
    ni = pl.program_id(1)
    mi = pl.program_id(2)
    n_n = pl.num_programs(1)
    n_m = pl.num_programs(2)
    H = hbp_ref.shape[2]

    @pl.when((ni == 0) & (mi == 0))
    def _():
        acc_ref[...] = jnp.zeros_like(acc_ref)

    # Tiles whose binder/target pairs are all masked out (invalid or farther than `threshold`)
    # contribute exactly zero — skip all VPU/EUP work for them.
    tile_active = act_ref[(b * n_n + ni) * n_m + mi] > 0

    @pl.when(tile_active)
    def _():
        # squared CA-CA distance: three broadcast FMAs on the VPU (no MXU matmul, no sqrt)
        bx = bx_ref[0]                               # (TN, 3)
        txT = txT_ref[0]                             # (3, TM)
        d2 = ((bx[:, 0:1] - txT[0:1, :]) ** 2
              + (bx[:, 1:2] - txT[1:2, :]) ** 2
              + (bx[:, 2:3] - txT[2:3, :]) ** 2)                              # (TN, TM)
        m2 = bm_ref[0] * tm_ref[0] * (d2 < threshold * threshold).astype(jnp.float32)

        # pairwise energy with M on the lane axis: static H-loop over (TN, TM) slabs.
        # The W_o contraction becomes VALU FMAs (no (TN, TM, H) intermediate, no XLU reduce).
        hb = hbp_ref[0]                              # (TN, H)
        ht = htpT_ref[0]                             # (H, TM)
        e = jnp.zeros(m2.shape, jnp.float32)
        for h in range(H):                           # H is static (block shape)
            pair = hb[:, h:h + 1] + ht[h:h + 1, :]                            # (TN, TM)
            silu = pair * (0.5 * (jnp.tanh(0.5 * pair) + 1.0))                # SiLU, one EUP tanh
            e = e + wo_ref[h] * silu
        e = e + wo_ref[H]                            # W_o bias
        acc_ref[...] = acc_ref[...] + jnp.sum(e * m2)

    @pl.when((ni == n_n - 1) & (mi == n_m - 1))
    def _():
        o_ref[...] = acc_ref[...]


def pairwise_energy(h_bind_proj, h_tgt_projT, bind_ca, tgt_ca, bind_mask, tgt_mask,
                    w_o, b_o, threshold, tile_n=None, tile_m=None):
    """h_bind_proj: (B,N,H) = U_o(h_bind); h_tgt_projT: (B,H,M) = U_o(h_tgt)^T."""
    B, N, H = h_bind_proj.shape
    M = h_tgt_projT.shape[2]
    TN = _pick_tile_sublane(N, cap=256, requested=tile_n)
    TM = _pick_tile_lane(M, cap=512, requested=tile_m)
    n_n, n_m = N // TN, M // TM

    hbp = h_bind_proj.astype(jnp.float32)
    htpT = h_tgt_projT.astype(jnp.float32)
    bx = bind_ca.astype(jnp.float32)                                          # (B, N, 3)
    tx = tgt_ca.astype(jnp.float32)                                           # (B, M, 3)
    txT = jnp.transpose(tx, (0, 2, 1))                                        # (B, 3, M)
    bmf = bind_mask.astype(jnp.float32)
    tmf = tgt_mask.astype(jnp.float32)
    bm = bmf.reshape(B, N, 1)
    tm = tmf.reshape(B, 1, M)

    # w_o / b_o as SMEM scalars (scalar prefetch), read per-h inside the kernel H-loop.
    scal = jnp.concatenate([w_o.reshape(H).astype(jnp.float32),
                            jnp.asarray(b_o, jnp.float32).reshape(1)], axis=0)

    # Per-tile activity flags (splash-attention-style SMEM gate): a tile contributes iff some
    # valid binder/target pair is closer than `threshold`.
    d2_full = jnp.sum((bx[:, :, None, :] - tx[:, None, :, :]) ** 2, axis=-1)   # (B, N, M)
    m2_full = bmf[:, :, None] * tmf[:, None, :] * (d2_full < threshold * threshold)
    active = (m2_full.reshape(B, n_n, TN, n_m, TM).max(axis=(2, 4)) > 0)
    active = active.reshape(B * n_n * n_m).astype(jnp.int32)

    kern = functools.partial(energy_kernel, threshold=float(threshold))
    out = pl.pallas_call(
        kern,
        out_shape=jax.ShapeDtypeStruct((B, 1), jnp.float32),
        grid_spec=pltpu.PrefetchScalarGridSpec(
            num_scalar_prefetch=2,
            grid=(B, n_n, n_m),
            in_specs=[
                pl.BlockSpec((1, TN, H), lambda b, ni, mi, wo, act: (b, ni, 0)),  # U_o(h_bind)
                pl.BlockSpec((1, H, TM), lambda b, ni, mi, wo, act: (b, 0, mi)),  # U_o(h_tgt)^T
                pl.BlockSpec((1, TN, 3), lambda b, ni, mi, wo, act: (b, ni, 0)),  # binder CA
                pl.BlockSpec((1, 3, TM), lambda b, ni, mi, wo, act: (b, 0, mi)),  # target CA^T
                pl.BlockSpec((1, TN, 1), lambda b, ni, mi, wo, act: (b, ni, 0)),  # binder mask
                pl.BlockSpec((1, 1, TM), lambda b, ni, mi, wo, act: (b, 0, mi)),  # target mask
            ],
            out_specs=pl.BlockSpec((1, 1), lambda b, ni, mi, wo, act: (b, 0)),
            scratch_shapes=[pltpu.VMEM((1, 1), jnp.float32)],                     # accumulator
        ),
        compiler_params=pltpu.CompilerParams(
            dimension_semantics=("parallel", "arbitrary", "arbitrary"),
            vmem_limit_bytes=_vmem_limit_bytes(),
        ),
    )(scal, active, hbp, htpT, bx, txT, bm, tm)
    return out.reshape(B)


# -----------------------------------------------------------------------------
# FAEnergyModel forward (noising + encoder stub + hoisted U_o + Pallas energy head)
# -----------------------------------------------------------------------------
def fa_energy_forward(params, binder, target, rng, threshold, tile_n=None, tile_m=None):
    true_X, bind_S, bind_A = binder
    tgt_X, tgt_S, tgt_A = target
    B, N = bind_S.shape

    bind_mask = jnp.minimum(bind_A[:, :, 1], 1).astype(jnp.float32)
    tgt_mask = jnp.minimum(tgt_A[:, :, 1], 1).astype(jnp.float32)

    # ---- rigid SO(3)/translation noising (forward() preprocessing) ----
    theta_range = jnp.asarray(np.linspace(0.1, np.pi, 100), jnp.float32)
    k1, k2, k3, k4 = jax.random.split(rng, 4)
    # TODO(synk): theta is sampled uniformly over theta_range; the reference samples from the
    # IGSO(3) density tables (_expansion/_density/_score are not in the provided source).
    tidx = jax.random.randint(k1, (B,), 0, 100)
    theta = theta_range[tidx]
    w_raw = jax.random.normal(k2, (B, 3), jnp.float32)
    hat_w = w_raw / jnp.linalg.norm(w_raw, axis=-1, keepdims=True)
    w = hat_w * theta[:, None]
    eps = jax.random.uniform(k3, (B, 1), jnp.float32, 0.1, 1.0)
    hat_t = jax.random.normal(k4, (B, 3), jnp.float32) * eps

    # Pallas kernel 1: center, rotate, translate binder coordinates (native layout).
    bind_X = rigid_noise(true_X, bind_mask, w, hat_t)

    # TODO(synk): FAEncoder replaced by deterministic stub (see header comment).
    h_bind = params["emb"][bind_S] + bind_X[:, :, 1, :] @ params["coord_w"]
    h_tgt = params["emb"][tgt_S] + tgt_X[:, :, 1, :].astype(jnp.float32) @ params["coord_w"]

    # U_o projections hoisted out of the kernel: two batched XLA matmuls at full MXU efficiency.
    hbp = h_bind @ params["W_u"] + params["b_u"]                              # (B, N, H)
    htpT = jnp.transpose(h_tgt @ params["W_u"] + params["b_u"], (0, 2, 1))    # (B, H, M)

    # Pallas kernel 2: SiLU / W_o pairwise energy with distance + validity masking.
    energy = pairwise_energy(hbp, htpT, bind_X[:, :, 1, :], tgt_X[:, :, 1, :],
                             bind_mask, tgt_mask, params["w_o"], params["b_o"],
                             threshold, tile_n=tile_n, tile_m=tile_m)
    return energy, bind_X


if __name__ == "__main__":
    B, N, M, H = 2, 16, 24, 32
    threshold = 10.0

    # deterministic parameters (shapes per FAEnergyModel.__init__)
    kp = jax.random.PRNGKey(0)
    kw1, kb1, kw2, ke, kc, kdat = jax.random.split(kp, 6)
    params = {
        "W_u": jax.random.normal(kw1, (H, H), jnp.float32) / np.sqrt(H),   # U_o
        "b_u": jax.random.normal(kb1, (H,), jnp.float32) * 0.01,
        "w_o": jax.random.normal(kw2, (H,), jnp.float32) / np.sqrt(H),     # W_o[1]
        "b_o": jnp.float32(0.05),
        "emb": jax.random.normal(ke, (21, H), jnp.float32) * 0.1,          # encoder stub
        "coord_w": jax.random.normal(kc, (3, H), jnp.float32) * 0.1,       # encoder stub
    }

    # deterministic example inputs
    kx1, kx2, ks1, ks2, ka1, ka2, kn = jax.random.split(kdat, 7)
    true_X = 3.0 * jax.random.normal(kx1, (B, N, 14, 3), jnp.float32)
    tgt_X = 3.0 * jax.random.normal(kx2, (B, M, 14, 3), jnp.float32)
    bind_S = jax.random.randint(ks1, (B, N), 0, 21)
    tgt_S = jax.random.randint(ks2, (B, M), 0, 21)
    bind_A = jax.random.randint(ka1, (B, N, 14), 0, 5)
    tgt_A = jax.random.randint(ka2, (B, M, 14), 0, 5)

    # tile_n=8 exercises the multi-tile accumulation path (energy grid = (B, 2, 1))
    energy, bind_X = fa_energy_forward(
        params, (true_X, bind_S, bind_A), (tgt_X, tgt_S, tgt_A), kn, threshold,
        tile_n=8, tile_m=None)
    jax.block_until_ready((energy, bind_X))
    print("KERNEL_OK")
</pallas_src>

<mosaic_0001>
module attributes {stable_mosaic.version = 11 : i64} {
  func.func @rigid_noise_kernel(%arg0: i32, %arg1: i32, %arg2: memref<1x16x42xf32, #tpu.memory_space<vmem>>, %arg3: memref<1x42x42xf32, #tpu.memory_space<vmem>>, %arg4: memref<1x1x42xf32, #tpu.memory_space<vmem>>, %arg5: memref<1x16x42xf32, #tpu.memory_space<vmem>>) attributes {dimension_semantics = [#tpu.dimension_semantics<parallel>, #tpu.dimension_semantics<parallel>], iteration_bounds = array<i64: 2, 1>, scalar_prefetch = 0 : i64, scratch_operands = 0 : i64, tpu.core_type = #tpu.core_type<tc>, window_params = [{transform_indices = @transform_0, window_bounds = array<i64: 1, 16, 42>}, {transform_indices = @transform_1, window_bounds = array<i64: 1, 42, 42>}, {transform_indices = @transform_2, window_bounds = array<i64: 1, 1, 42>}, {transform_indices = @transform_3, window_bounds = array<i64: 1, 16, 42>}]} {
    %c0 = arith.constant 0 : index
    %c0_0 = arith.constant 0 : index
    %c0_1 = arith.constant 0 : index
    %0 = vector.load %arg2[%c0, %c0_0, %c0_1] : memref<1x16x42xf32, #tpu.memory_space<vmem>>, vector<1x16x42xf32>
    %1 = vector.shape_cast %0 : vector<1x16x42xf32> to vector<16x42xf32>
    %c0_2 = arith.constant 0 : index
    %c0_3 = arith.constant 0 : index
    %c0_4 = arith.constant 0 : index
    %2 = vector.load %arg3[%c0_2, %c0_3, %c0_4] : memref<1x42x42xf32, #tpu.memory_space<vmem>>, vector<1x42x42xf32>
    %3 = vector.shape_cast %2 : vector<1x42x42xf32> to vector<42x42xf32>
    %cst = arith.constant dense<0.000000e+00> : vector<16x42xf32>
    %4 = tpu.matmul %1, %3, %cst {dimension_numbers = #tpu.dot_dimension_numbers<[1], [0], [0], [1], [0, 0, 1, 1], [], []>} : vector<16x42xf32>, vector<42x42xf32>, vector<16x42xf32> -> vector<16x42xf32>
    %c0_5 = arith.constant 0 : index
    %c0_6 = arith.constant 0 : index
    %c0_7 = arith.constant 0 : index
    %5 = vector.load %arg4[%c0_5, %c0_6, %c0_7] : memref<1x1x42xf32, #tpu.memory_space<vmem>>, vector<1x1x42xf32>
    %6 = vector.shape_cast %5 : vector<1x1x42xf32> to vector<1x42xf32>
    %7 = vector.broadcast %6 : vector<1x42xf32> to vector<16x42xf32>
    %8 = arith.addf %4, %7 : vector<16x42xf32>
    %c0_8 = arith.constant 0 : index
    %c0_9 = arith.constant 0 : index
    %c0_10 = arith.constant 0 : index
    %9 = vector.load %arg5[%c0_8, %c0_9, %c0_10] : memref<1x16x42xf32, #tpu.memory_space<vmem>>, vector<1x16x42xf32>
    %10 = vector.shape_cast %9 : vector<1x16x42xf32> to vector<16x42xf32>
    %11 = vector.shape_cast %8 : vector<16x42xf32> to vector<1x16x42xf32>
    tpu.vector_store %arg5[%c0_8, %c0_9, %c0_10], %11 {strides = array<i32>} : memref<1x16x42xf32, #tpu.memory_space<vmem>>, vector<1x16x42xf32>,
    return
  }
  func.func @transform_0(%arg0: i32, %arg1: i32) -> (i32, i32, i32) {
    %c0_i32 = arith.constant 0 : i32
    %c0_i32_0 = arith.constant 0 : i32
    return %arg0, %arg1, %c0_i32 : i32, i32, i32
  }
  func.func @transform_1(%arg0: i32, %arg1: i32) -> (i32, i32, i32) {
    %c0_i32 = arith.constant 0 : i32
    %c0_i32_0 = arith.constant 0 : i32
    %c0_i32_1 = arith.constant 0 : i32
    return %arg0, %c0_i32, %c0_i32_0 : i32, i32, i32
  }
  func.func @transform_2(%arg0: i32, %arg1: i32) -> (i32, i32, i32) {
    %c0_i32 = arith.constant 0 : i32
    %c0_i32_0 = arith.constant 0 : i32
    %c0_i32_1 = arith.constant 0 : i32
    return %arg0, %c0_i32, %c0_i32_0 : i32, i32, i32
  }
  func.func @transform_3(%arg0: i32, %arg1: i32) -> (i32, i32, i32) {
    %c0_i32 = arith.constant 0 : i32
    %c0_i32_0 = arith.constant 0 : i32
    return %arg0, %arg1, %c0_i32 : i32, i32, i32
  }
}

</mosaic_0001>

<bundles_post_ra>
// kernel: tpu_custom_call.1
= control target key start
LH: loop header
LB: loop body
LE: loop exit
PB: predicated region body
PF: predicated region fallthrough
CT: control target
= control target key end

     0   :  { %8 = vsyncpa [#allocation3], 0  ;;  %s703_s0 = inlined_call_operand.vmem [shape: f32[2,16,42], index: 0, kind: input, shape index: {}]   ;;  %s704_s1 = inlined_call_operand.vmem [shape: f32[2,42,42], index: 1, kind: input, shape index: {}]   ;;  %s705_s2 = inlined_call_operand.vmem [shape: f32[2,1,42], index: 2, kind: input, shape index: {}]   ;;  %s706_s3 = inlined_call_operand.hbm [shape: f32[2,16,42], index: 3, kind: output, shape index: {}]  }
   0x1   :  { %10 = vsyncpa [#allocation3 + $0x1], 0  ;;  %s586_s12 = smov 0   ;;  %s588_s13 = smov 0  }
   0x2   :  { %s590_s14 = smov 0   ;;  %s592_s15 = smov 0  }
   0x3   :  { %s594_s16 = smov 0   ;;  %s596_s17 = smov 0  }
   0x4 LB: > { %s400_s18 = sadd.s32 4294967295, %s562_s17   ;;  %s401_s19 = sadd.s32 4294967294, %s562_s17   ;;  %s562_s17 = sphi %s596_s17, %s16_s17   ;;  %s558_s16 = sphi %s594_s16, %s713_s16   ;;  %s554_s15 = sphi %s592_s15, %s712_s15   ;;  %s550_s14 = sphi %s590_s14, %s711_s14   ;;  %s546_s13 = sphi %s588_s13, %s710_s13   ;;  %s542_s12 = sphi %s586_s12, %s709_s12  }
   0x5   : > { %s28_s20 = sadd.s32 1, %s558_s16  ;;  %s117_s21 = sadd.s32 1, %s550_s14 }
   0x6   : > { %p30_p0 = scmp.ge.s32.totalorder %s28_s20, 2  ;;  %p127_p1 = scmp.ne.s32.totalorder %s550_s14, %s546_s13 }
   0x7   : > { %p128_p2 = scmp.eq.s32.totalorder %s400_s18, 1  ;;  %p133_p3 = scmp.ne.s32.totalorder %s546_s13, %s542_s12 }
   0x8   : > { %s715_s20 = smov (%p30_p0, %s28_s20), 0  ;;  %p134_p5 = scmp.eq.s32.totalorder %s401_s19, 1 }
   0x9   : > { %p626_p4 = por %p128_p2, %p127_p1  ;;  %s112_s23 = ssub.s32 %s558_s16, %s715_s20 }
   0xa   : > { %p404_p6 = scmp.ge.s32.totalorder %s562_s17, 1  ;;  %p115_p7 = scmp.eq.s32.totalorder %s112_s23, 0 }
   0xb   : > { %p633_p8 = por %p134_p5, %p133_p3  ;;  %p179_p9 = scmp.lt.s32.totalorder %s562_s17, 3 }
   0xc   : > { %s639_s25 = scalar_select %p115_p7, %s550_s14, %s117_s21  }
   0xd   : > { %p180_p10 = pnand %p404_p6, %p179_p9 }
   0xe   : > { %p216_p11 = scmp.lt.s32.totalorder (!%p180_p10), %s554_s15, 1  ;;  %s212_s11 = sand.u32 (!%p180_p10), 1, %s546_s13  }
   0xf   : > { %183 = sbr.rel (%p180_p10) target bundleno = 170 (0xaa), region = 32  ;;  %s405_s18 = sshll.u32 (!%p180_p10), %s212_s11, 4 }
  0x10   : > { %s418_s19 = sshll.u32 (!%p180_p10), %s554_s15, 4  ;;  %s214_s4 = scalar_lea.vmem (!%p180_p10), [#allocation2], %s405_s18 }
  0x11   : > { %s297_s5 = sshll.u32 (!%p180_p10), %s214_s4, 4  ;;  %s504_s9 = scalar_lea.hbm (!%p180_p10), %s706_s3, 32  ;;  %s298_s5 = int_to_ptr.vmem [resolvable:$true] %s297_s5 }
  0x14   : > { %s643_s26 = scalar_select %p216_p11, %s554_s15, 1  ;;  %vm253_vm0 = vcmask 1041408   ;;  %vm246_vm1 = vcmask 343040  }
  0x15   : > { %s283_s15 = scalar_lea.sflag [#allocation3], %s212_s11 }
  0x16   : > { %s425_s27 = smul.u32 48, %s643_s26  ;;  %s232_s30 = scalar_lea.vmem %s705_s2, %s643_s26 }
  0x17   : > { %s417_s7 = sshll.u32 %s643_s26, 4  ;;  %v483_v8 = vld [vmem:[%s232_s30] ss:$0 sm:$0xff] }
  0x18   : > { %s229_s6 = scalar_lea.vmem %s704_s1, %s425_s27  ;;  %s223_s10 = scalar_lea.vmem %s703_s0, %s417_s7 }
  0x19   : > { %v241_v0 = vld [vmem:[%s229_s6 + $0x28] sm:$0x3]  ;;  %v240_v1 = vld [vmem:[%s229_s6 + $0x20] sm:$0xff]  ;;  %v239_v2 = vld [vmem:[%s229_s6 + $0x18] sm:$0xff]  ;;  %s296_s27 = scalar_lea.hbm %s706_s3, %s418_s19 }
  0x1a   : > { %409 = vmatpush.msk.msra.mxu0 %vm253_vm0, %v241_v0  ;;  %419 = vmatpush.msk.msra.mxu1 %vm253_vm0, %v241_v0  ;;  %v238_v3 = vld [vmem:[%s229_s6 + $0x10] sm:$0xff]  ;;  %v237_v4 = vld [vmem:[%s229_s6 + $0x8] sm:$0xff]  ;;  %v236_v5 = vld [vmem:[%s229_s6] sm:$0xff]  ;;  %s299_s6 = sshll.u32 %s296_s27, 4  ;;  %s300_s6 = int_to_ptr.hbm [resolvable:$true] %s299_s6 }
  0x1b   : > { %v234_v6 = vld [vmem:[%s223_s10] sm:$0xff]  ;;  %v235_v7 = vld [vmem:[%s223_s10 + $0x8] sm:$0xff]  ;;  %s498_s7 = sshra.s32 %s300_s6, 4  ;;  %s499_s7 = int_to_ptr.hbm [resolvable:$true] %s498_s7 }
  0x1c   : > { %268 = vmatpush.msra.mxu0 %v240_v1  ;;  %420 = vmatpush.msra.mxu1 %v240_v1  ;;  %s500_s8 = scalar_lea.hbm %s499_s7, 16  ;;  %p505_p1 = scmp.lt.s32.totalorder %s499_s7, %s706_s3 }
  0x1d   : > { %p501_p12 = scmp.ne.s32.totalorder %s499_s7, %s500_s8  ;;  %p506_p2 = scmp.lt.s32.totalorder %s504_s9, %s500_s8 }
  0x1e   : > { %269 = vmatpush.msra.mxu0 %v239_v2  ;;  %421 = vmatpush.msra.mxu1 %v239_v2 }
  0x1f   : > { %p502_p13 = pnand %p501_p12, %p626_p4  ;;  %p507_p3 = por %p506_p2, %p505_p1 }
  0x20   : > { %270 = vmatpush.msra.mxu0 %v238_v3  ;;  %422 = vmatpush.msra.mxu1 %v238_v3 }
  0x21   : > { %p503_p0 = pneg %p502_p13 }
  0x22   : > { %271 = vmatpush.msra.mxu0 %v237_v4  ;;  %423 = vmatpush.msra.mxu1 %v237_v4 }
  0x23   : > { %p508_p5 = pnand %p507_p3, %p503_p0 }
  0x24   : > { %272 = vmatpush.msra.mxu0 %v236_v5  ;;  %424 = vmatpush.msra.mxu1 %v236_v5 }
  0x25   : > { %410 = vmatmul.msk.f32.vlgmr.msra.gmra.mxu0 %vm246_vm1, %v234_v6  ;;  %411 = vmatmul.msk.f32.vlgmr.msra.gmra.mxu1 %vm246_vm1, %v235_v7 }
  0xa2   : > { %v274_v9 = vpop.f32.mrf.mxu0  ;;  %v277_v10 = vpop.f32.mrf.mxu1 }
  0xa3   : > { %v275_v11 = vadd.f32 %v483_v8, %v274_v9  ;;  %v278_v12 = vadd.f32 %v483_v8, %v277_v10 }
  0xa5   : > { %280 = vst.msk [vmem:[%s214_s4] sm:$0xff] %vm246_vm1, %v275_v11 }
  0xa6   : > { %281 = vst.msk [vmem:[%s214_s4 + $0x8] sm:$0xff] %vm246_vm1, %v278_v12 }
  0xa7   : > { %511 = shalt.err (!%p508_p5)
}
  0xa8   : > { %s564_s11 = smov 128   ;;  %s565_s19 = smov 8  }
  0xa9   : > { %426 = dma.vmem_to_hbm [thread:$0]  (%p626_p4), %s298_s5, 256, %s300_s6, %s283_s15, %s564_s11, %s564_s11, %s565_s19  }
  0xaa PF: > { %p432_p6 = scmp.ge.s32.totalorder %s562_s17, 2  ;;  %s314_s21 = sand.u32 1, %s542_s12  }
  0xab   : > { %s315_s23 = scalar_lea.sflag [#allocation3], %s314_s21 }
  0xac   : > { %p429_p7 = pnand %p432_p6, %p633_p8 }
  0xae   : > { %p430_p9 = pneg %p429_p7 }
  0xb0   : > { %537 = dma.done.wait (%p430_p9), %s315_s23, 256  }
  0xb1   : > { %539 = vsyncadd (%p430_p9), %s315_s23, 4294967040  ;;  %s16_s17 = sadd.s32 1, %s562_s17   ;;  %s709_s12 = smov %s546_s13 }
  0xb2   : > { %p13_p10 = scmp.ge.s32.totalorder %s16_s17, 4   ;;  %s710_s13 = smov %s550_s14 }
  0xb3   : > { %s711_s14 = smov %s639_s25  ;;  %s712_s15 = smov %s558_s16 }
  0xb4   : > { %s713_s16 = smov %s715_s20  ;;  %15 = sbr.rel (!%p13_p10) target bundleno = 4 (0x4), region = 73 }
  0xb9   :  { %321 = vsyncpa [#allocation3], 1 }
  0xba   :  { %323 = vsyncpa [#allocation3 + $0x1], 1 }

</bundles_post_ra>
